<compile_context>
chip_gen: v5e
topology: v5e:2x2
jax: 0.10.0
libtpu: 0.0.40
codegen_flags: <defaults>
</compile_context>

<pallas_src>
import functools

import jax
import jax.numpy as jnp
from jax import lax
from jax.experimental import pallas as pl
from jax.experimental.pallas import tpu as pltpu


def _focal_loss_kernel(logits_ref, targets_ref, out_ref, acc_ref, *,
                       gamma_int, gamma_f, scale, n_rows, block_n,
                       blocks_per_core, needs_mask):
    """Processes one (block_n, C) row block; accumulates this core's partial sum."""
    i = pl.program_id(1)            # reduction ("arbitrary") axis

    @pl.when(i == 0)
    def _init():
        acc_ref[...] = jnp.zeros_like(acc_ref)

    x = logits_ref[...].astype(jnp.float32)              # (block_n, C), f32 in VMEM
    t = targets_ref[...]                                  # (block_n, 1) int32
    bn, c = x.shape

    # Numerically stable row-wise log-softmax cross entropy.
    m = jnp.max(x, axis=-1, keepdims=True)                # (block_n, 1)
    z = x - m
    lse = jnp.log(jnp.sum(jnp.exp(z), axis=-1, keepdims=True))

    # Gather the target logit via a lane-iota compare + select (no f32 one-hot).
    cols = lax.broadcasted_iota(jnp.int32, (bn, c), 1)
    tgt_z = jnp.sum(jnp.where(cols == t, z, 0.0), axis=-1, keepdims=True)

    ce = lse - tgt_z                                       # per-sample CE >= 0
    pt = jnp.exp(-ce)
    q = jnp.maximum(1.0 - pt, 0.0)                         # clamp: pow NaN guard
    if gamma_int is not None:
        mod = lax.integer_pow(q, gamma_int)                # VALU repeated multiply
    else:
        mod = q ** gamma_f                                 # generic (non-integer) gamma
    focal = mod * ce                                       # alpha folded into `scale`

    if needs_mask:
        # Mask tail rows / duplicated clamp blocks by LOGICAL row index (the
        # index_map clamps only the DMA source block, not this index).  Must
        # stay a select so garbage rows can't leak Inf/NaN into the sum.
        g = pl.program_id(0) * blocks_per_core + i
        rows = g * block_n + lax.broadcasted_iota(jnp.int32, (bn, 1), 0)
        focal = jnp.where(rows < n_rows, focal, 0.0)

    acc_ref[...] += jnp.sum(focal)                         # VMEM scalar accumulate

    @pl.when(i == blocks_per_core - 1)
    def _finalize():
        # scale = alpha / N, so the stored value is this core's share of the mean.
        out_ref[0, 0] = jnp.sum(acc_ref[...]) * scale


def _round_up(x, m):
    return ((x + m - 1) // m) * m


def _sublane_multiple(dtype):
    return {4: 8, 2: 16, 1: 32}.get(jnp.dtype(dtype).itemsize, 8)


def _vmem_capacity_bytes():
    try:
        cap = int(pltpu.get_tpu_info().vmem_capacity_bytes)
        if cap > 0:
            return cap
    except Exception:
        pass
    return 64 * 1024 * 1024          # v7x-safe fallback (smallest current generation)


def focal_loss(logits: jax.Array, targets: jax.Array,
               alpha: float = 1.0, gamma: float = 2,
               block_rows: int | None = None) -> jax.Array:
    """Pallas TPU implementation of FocalLoss.forward.

    logits : (N, C) float array (f32 or bf16 -- streamed uncast)
    targets: (N,)   integer class indices
    returns scalar float32 (mean focal loss over the batch)
    """
    n, c = logits.shape
    targets2d = targets.astype(jnp.int32).reshape(n, 1)

    itemsize = jnp.dtype(logits.dtype).itemsize
    sub = _sublane_multiple(logits.dtype)
    vmem_cap = _vmem_capacity_bytes()

    if block_rows is None:
        # Byte-based block sizing.  Per-row working set:
        #   * double-buffered logits stream             : 2 * C * itemsize
        #   * ~5 live f32/int32 (block, C) temps (x cast, z, exp(z), iota,
        #     select), lane-padded to >=128 when C < 128: 5 * max(C,128) * 4
        #   * targets double-buffer + slack             : 64
        budget = int(vmem_cap * 0.45)          # headroom for compiler temps
        per_row = 2 * c * itemsize + 5 * max(c, 128) * 4 + 64
        block_rows = budget // per_row
        block_rows = min(block_rows, 32768)    # sanity cap on temp/iota height
    block_n = max(sub, (int(block_rows) // sub) * sub)
    block_n = min(block_n, _round_up(n, sub))

    total_blocks = pl.cdiv(n, block_n)
    # Leading "parallel" axis: row blocks split across v7x's two TensorCores
    # (sequential -- and free -- on single-TC v5e/v6e).
    num_splits = 2 if total_blocks >= 2 else 1
    blocks_per_core = pl.cdiv(total_blocks, num_splits)
    covered = num_splits * blocks_per_core * block_n
    needs_mask = covered != n
    last_block = total_blocks - 1

    gamma_f = float(gamma)
    gamma_int = int(gamma_f) if (gamma_f.is_integer() and gamma_f >= 0) else None

    kernel = functools.partial(
        _focal_loss_kernel,
        gamma_int=gamma_int, gamma_f=gamma_f,
        scale=float(alpha) / float(n),         # fold alpha and 1/N; no in-kernel divide
        n_rows=n, block_n=block_n,
        blocks_per_core=blocks_per_core, needs_mask=needs_mask,
    )

    if num_splits * blocks_per_core == total_blocks:
        def row_block_map(core, i):
            return (core * blocks_per_core + i, 0)
    else:
        def row_block_map(core, i):
            # Clamp so duplicated tail blocks never DMA past the array; their
            # rows are masked inside the kernel by logical index.
            return (jnp.minimum(core * blocks_per_core + i, last_block), 0)

    grid_spec = pltpu.PrefetchScalarGridSpec(
        num_scalar_prefetch=0,
        grid=(num_splits, blocks_per_core),
        in_specs=[
            pl.BlockSpec((block_n, c), row_block_map),   # logits row block (uncast)
            pl.BlockSpec((block_n, 1), row_block_map),   # target row block
        ],
        out_specs=pl.BlockSpec((1, 1), lambda core, i: (core, 0),
                               memory_space=pltpu.SMEM),  # per-core partial
        scratch_shapes=[pltpu.VMEM((1, 1), jnp.float32)], # per-core accumulator
    )

    # ~75% of physical VMEM: ~48 MiB on v7x, ~96 MiB on v5e/v6e.
    vmem_limit = min(int(vmem_cap * 0.75), 112 * 1024 * 1024)

    out = pl.pallas_call(
        kernel,
        out_shape=jax.ShapeDtypeStruct((num_splits, 1), jnp.float32),
        grid_spec=grid_spec,
        compiler_params=pltpu.CompilerParams(
            dimension_semantics=("parallel", "arbitrary"),
            vmem_limit_bytes=vmem_limit,
        ),
    )(logits, targets2d)
    return jnp.sum(out)        # add the (<=2) per-core partials


def _focal_loss_ref(logits, targets, alpha=1.0, gamma=2):
    # Pure-JAX reference (F.cross_entropy reduction='none' + focal + mean).
    logp = jax.nn.log_softmax(logits.astype(jnp.float32), axis=-1)
    ce = -jnp.take_along_axis(logp, targets[:, None].astype(jnp.int32), axis=-1)[:, 0]
    pt = jnp.exp(-ce)
    return jnp.mean(alpha * (1.0 - pt) ** gamma * ce)


if __name__ == "__main__":
    key = jax.random.PRNGKey(0)
    k1, k2, k3, k4, k5, k6 = jax.random.split(key, 6)

    # 1) Module-sized case: N=8 samples, C=32 classes, f32, default block sizing.
    N, C = 8, 32
    logits = jax.random.normal(k1, (N, C), dtype=jnp.float32)
    targets = jax.random.randint(k2, (N,), 0, C, dtype=jnp.int32)
    loss = jax.block_until_ready(focal_loss(logits, targets, alpha=1.0, gamma=2))
    ref = _focal_loss_ref(logits, targets, alpha=1.0, gamma=2)
    assert jnp.allclose(loss, ref, atol=1e-5, rtol=1e-5), (loss, ref)

    # 2) Multi-block bf16 path exercising the 2-way core split, the clamped
    #    duplicate tail block and remainder masking: N=200, block_n=48 ->
    #    5 row blocks -> grid (2, 3); core 1's last logical block is fully masked.
    N2, C2 = 200, 32
    logits2 = jax.random.normal(k3, (N2, C2), dtype=jnp.float32).astype(jnp.bfloat16)
    targets2 = jax.random.randint(k4, (N2,), 0, C2, dtype=jnp.int32)
    loss2 = jax.block_until_ready(
        focal_loss(logits2, targets2, alpha=0.25, gamma=2, block_rows=48))
    ref2 = _focal_loss_ref(logits2, targets2, alpha=0.25, gamma=2)
    assert jnp.allclose(loss2, ref2, atol=2e-3, rtol=2e-3), (loss2, ref2)

    # 3) Non-integer gamma path (generic pow + q clamp), default block sizing,
    #    no-mask fast path (covered rows == N).
    N3, C3 = 32, 64
    logits3 = jax.random.normal(k5, (N3, C3), dtype=jnp.float32)
    targets3 = jax.random.randint(k6, (N3,), 0, C3, dtype=jnp.int32)
    loss3 = jax.block_until_ready(focal_loss(logits3, targets3, alpha=1.0, gamma=1.5))
    ref3 = _focal_loss_ref(logits3, targets3, alpha=1.0, gamma=1.5)
    assert jnp.allclose(loss3, ref3, atol=1e-5, rtol=1e-5), (loss3, ref3)

    print("KERNEL_OK")
</pallas_src>

<mosaic_0001>
module attributes {stable_mosaic.version = 11 : i64} {
  func.func @_focal_loss_kernel(%arg0: i32, %arg1: i32, %arg2: memref<8x32xf32, #tpu.memory_space<vmem>>, %arg3: memref<8x1xi32, #tpu.memory_space<vmem>>, %arg4: memref<1x1xf32, #tpu.memory_space<smem>>, %arg5: memref<1x1xf32, #tpu.memory_space<vmem>>) attributes {dimension_semantics = [#tpu.dimension_semantics<parallel>, #tpu.dimension_semantics<arbitrary>], iteration_bounds = array<i64: 1, 1>, scalar_prefetch = 0 : i64, scratch_operands = 1 : i64, tpu.core_type = #tpu.core_type<tc>, window_params = [{transform_indices = @transform_0, window_bounds = array<i64: 8, 32>}, {transform_indices = @transform_1, window_bounds = array<i64: 8, 1>}, {transform_indices = @transform_2, window_bounds = array<i64: 1, 1>}]} {
    %c0_i32 = arith.constant 0 : i32
    %0 = arith.cmpi eq, %arg1, %c0_i32 : i32
    %1 = arith.extui %0 : i1 to i32
    %c0_i32_0 = arith.constant 0 : i32
    %2 = arith.cmpi ne, %1, %c0_i32_0 : i32
    scf.if %2 {
      %cst_17 = arith.constant 0.000000e+00 : f32
      %41 = vector.broadcast %cst_17 : f32 to vector<1x1xf32>
      %c0_18 = arith.constant 0 : index
      %c0_19 = arith.constant 0 : index
      %42 = vector.load %arg5[%c0_18, %c0_19] : memref<1x1xf32, #tpu.memory_space<vmem>>, vector<1x1xf32>
      tpu.vector_store %arg5[%c0_18, %c0_19], %41 {strides = array<i32>} : memref<1x1xf32, #tpu.memory_space<vmem>>, vector<1x1xf32>,
    } else {
    }
    %c0 = arith.constant 0 : index
    %c0_1 = arith.constant 0 : index
    %3 = vector.load %arg2[%c0, %c0_1] : memref<8x32xf32, #tpu.memory_space<vmem>>, vector<8x32xf32>
    %c0_2 = arith.constant 0 : index
    %c0_3 = arith.constant 0 : index
    %4 = vector.load %arg3[%c0_2, %c0_3] : memref<8x1xi32, #tpu.memory_space<vmem>>, vector<8x1xi32>
    %cst = arith.constant dense<0xFF800000> : vector<8xf32>
    %5 = vector.multi_reduction <maximumf>, %3, %cst [1] : vector<8x32xf32> to vector<8xf32>
    %6 = vector.shape_cast %5 : vector<8xf32> to vector<8x1xf32>
    %7 = vector.broadcast %6 : vector<8x1xf32> to vector<8x32xf32>
    %8 = arith.subf %3, %7 : vector<8x32xf32>
    %9 = math.exp %8 : vector<8x32xf32>
    %cst_4 = arith.constant dense<0.000000e+00> : vector<8xf32>
    %10 = vector.multi_reduction <add>, %9, %cst_4 [1] : vector<8x32xf32> to vector<8xf32>
    %11 = vector.shape_cast %10 : vector<8xf32> to vector<8x1xf32>
    %12 = math.log %11 : vector<8x1xf32>
    %13 = tpu.iota {dimensions = array<i32: 1>} : vector<8x32xi32>
    %14 = vector.broadcast %4 : vector<8x1xi32> to vector<8x32xi32>
    %15 = arith.cmpi eq, %13, %14 : vector<8x32xi32>
    %cst_5 = arith.constant 0.000000e+00 : f32
    %16 = vector.broadcast %cst_5 : f32 to vector<8x32xf32>
    %17 = arith.select %15, %8, %16 : vector<8x32xi1>, vector<8x32xf32>
    %cst_6 = arith.constant dense<0.000000e+00> : vector<8xf32>
    %18 = vector.multi_reduction <add>, %17, %cst_6 [1] : vector<8x32xf32> to vector<8xf32>
    %19 = vector.shape_cast %18 : vector<8xf32> to vector<8x1xf32>
    %20 = arith.subf %12, %19 : vector<8x1xf32>
    %cst_7 = arith.constant 0.000000e+00 : f32
    %21 = vector.broadcast %cst_7 : f32 to vector<8x1xf32>
    %22 = arith.subf %21, %20 : vector<8x1xf32>
    %23 = math.exp %22 : vector<8x1xf32>
    %cst_8 = arith.constant 1.000000e+00 : f32
    %24 = vector.broadcast %cst_8 : f32 to vector<8x1xf32>
    %25 = arith.subf %24, %23 : vector<8x1xf32>
    %cst_9 = arith.constant 0.000000e+00 : f32
    %26 = vector.broadcast %cst_9 : f32 to vector<8x1xf32>
    %27 = arith.maximumf %25, %26 : vector<8x1xf32>
    %28 = arith.mulf %27, %27 : vector<8x1xf32>
    %29 = arith.mulf %28, %20 : vector<8x1xf32>
    %c0_10 = arith.constant 0 : index
    %c0_11 = arith.constant 0 : index
    %30 = vector.load %arg5[%c0_10, %c0_11] : memref<1x1xf32, #tpu.memory_space<vmem>>, vector<1x1xf32>
    %31 = vector.shape_cast %29 : vector<8x1xf32> to vector<1x8x1xf32>
    %cst_12 = arith.constant dense<0.000000e+00> : vector<1xf32>
    %32 = vector.multi_reduction <add>, %31, %cst_12 [1, 2] : vector<1x8x1xf32> to vector<1xf32>
    %33 = vector.shape_cast %32 : vector<1xf32> to vector<1x1x1xf32>
    %34 = vector.extract %33[0, 0, 0] : f32 from vector<1x1x1xf32>
    %35 = vector.broadcast %34 : f32 to vector<1x1xf32>
    %36 = arith.addf %30, %35 : vector<1x1xf32>
    %c0_13 = arith.constant 0 : index
    %c0_14 = arith.constant 0 : index
    %37 = vector.load %arg5[%c0_13, %c0_14] : memref<1x1xf32, #tpu.memory_space<vmem>>, vector<1x1xf32>
    tpu.vector_store %arg5[%c0_13, %c0_14], %36 {strides = array<i32>} : memref<1x1xf32, #tpu.memory_space<vmem>>, vector<1x1xf32>,
    %c0_i32_15 = arith.constant 0 : i32
    %38 = arith.cmpi eq, %arg1, %c0_i32_15 : i32
    %39 = arith.extui %38 : i1 to i32
    %c0_i32_16 = arith.constant 0 : i32
    %40 = arith.cmpi ne, %39, %c0_i32_16 : i32
    scf.if %40 {
      %c0_17 = arith.constant 0 : index
      %c0_18 = arith.constant 0 : index
      %41 = vector.load %arg5[%c0_17, %c0_18] : memref<1x1xf32, #tpu.memory_space<vmem>>, vector<1x1xf32>
      %42 = vector.shape_cast %41 : vector<1x1xf32> to vector<1x1x1xf32>
      %cst_19 = arith.constant dense<0.000000e+00> : vector<1xf32>
      %43 = vector.multi_reduction <add>, %42, %cst_19 [1, 2] : vector<1x1x1xf32> to vector<1xf32>
      %44 = vector.shape_cast %43 : vector<1xf32> to vector<1x1x1xf32>
      %45 = vector.extract %44[0, 0, 0] : f32 from vector<1x1x1xf32>
      %cst_20 = arith.constant 1.250000e-01 : f32
      %46 = arith.mulf %45, %cst_20 : f32
      %c0_21 = arith.constant 0 : index
      %c0_22 = arith.constant 0 : index
      %47 = memref.load %arg4[%c0_21, %c0_22] : memref<1x1xf32, #tpu.memory_space<smem>>
      memref.store %46, %arg4[%c0_21, %c0_22] : memref<1x1xf32, #tpu.memory_space<smem>>
    } else {
    }
    return
  }
  func.func @transform_0(%arg0: i32, %arg1: i32) -> (i32, i32) {
    %c1_i32 = arith.constant 1 : i32
    %0 = arith.muli %arg0, %c1_i32 : i32
    %1 = arith.addi %0, %arg1 : i32
    %c0_i32 = arith.constant 0 : i32
    %c0_i32_0 = arith.constant 0 : i32
    return %1, %c0_i32 : i32, i32
  }
  func.func @transform_1(%arg0: i32, %arg1: i32) -> (i32, i32) {
    %c1_i32 = arith.constant 1 : i32
    %0 = arith.muli %arg0, %c1_i32 : i32
    %1 = arith.addi %0, %arg1 : i32
    %c0_i32 = arith.constant 0 : i32
    %c0_i32_0 = arith.constant 0 : i32
    return %1, %c0_i32 : i32, i32
  }
  func.func @transform_2(%arg0: i32, %arg1: i32) -> (i32, i32) {
    %c0_i32 = arith.constant 0 : i32
    %c0_i32_0 = arith.constant 0 : i32
    return %arg0, %c0_i32 : i32, i32
  }
}

</mosaic_0001>

<bundles_post_ra>
// kernel: tpu_custom_call.1
= control target key start
LH: loop header
LB: loop body
LE: loop exit
PB: predicated region body
PF: predicated region fallthrough
CT: control target
= control target key end

     0   :  { %vm54_vm0 = vcmask 261120   ;;  %s194_s0 = inlined_call_operand.vmem [shape: f32[8,32], index: 0, kind: input, shape index: {}]   ;;  %s195_s1 = inlined_call_operand.vmem [shape: s32[8,1], index: 1, kind: input, shape index: {}]   ;;  %s196_s2 = inlined_call_operand.hbm [shape: f32[1,1], index: 2, kind: output, shape index: {}]  }
   0x1   :  { %v52_v0 = vld [vmem:[%s194_s0] sm:$0xff] }
   0x2   :  { %7 = vsyncpa [#allocation4], 0  ;;  %v55_v1 = vsel %vm54_vm0, %v52_v0, -inf  ;;  %v164_v2 = vmov 0   ;;  %v53_v3 = vld [vmem:[%s195_s1] sm:$0xff]  ;;  %v66_v9 = vlaneseq  ;;  %vm85_vm2 = vcmask 7168  }
   0x3   :  { %143 = vset.pattern.permute.xlu0 %v164_v2  ;;  %vm50_vm3 = vcmask 0   ;;  %v165_v27 = vmov 0.0   ;;  %s114_s14 = sshll.u32 %s196_s2, 4  ;;  %s166_s17 = smov [#allocation3]   ;;  %s115_s14 = int_to_ptr.hbm [resolvable:$true] %s114_s14 }
   0x4   :  { %56 = vmax.xlane.f32.xlu0 %v55_v1  ;;  %v67_v10 = vand.u32 127, %v66_v9  ;;  %51 = vst.msk [vmem:[#allocation2] sm:$0x1] %vm50_vm3, %v165_v27 }
   0xb   :  { %v84_v35 = vld [vmem:[#allocation2] sm:$0x1] }
  0x18   :  { %69 = vperm.xlu0 %143, %v53_v3  }
  0x77   :  { %v57_v4 = vpop.xlane.xlu0 %56 }
  0x78   :  { %v58_v5 = vsub.f32 %v52_v0, %v57_v4 }
  0x7a   :  { %v59_v6 = vmul.f32 1.442695, %v58_v5 }
  0x7c   :  { %144 = vpow2.f32 %v59_v6 }
  0x82   :  { %v145_v7 = vpop.eup %144 }
  0x83   :  { %v61_v8 = vsel %vm54_vm0, %v145_v7, 0.0 }
  0x84   :  { %62 = vadd.xlane.f32.xlu1 %v61_v8 }
  0x8a   :  { %v70_v11 = vpop.permute.xlu0 %69 }
  0x8b   :  { %vm71_vm1 = vcmp.eq.s32.totalorder %v67_v10, %v70_v11 }
  0x8c   :  { %v72_v12 = vsel %vm71_vm1, %v58_v5, 0.0 }
  0x8d   :  { %v73_v13 = vsel %vm54_vm0, %v72_v12, 0.0 }
  0x8e   :  { %74 = vadd.xlane.f32.xlu1 %v73_v13 }
  0xf7   :  { %v63_v14 = vpop.xlane.xlu1 %62 }
  0xf8   :  { %146 = vlog2.f32 %v63_v14 }
  0xfe   :  { %v147_v15 = vpop.eup %146 }
  0xff   :  { %v65_v16 = vmul.f32 0.6931472, %v147_v15 }
 0x101   :  { %v75_v17 = vpop.xlane.xlu1 %74 }
 0x102   :  { %v76_v18 = vsub.f32 %v65_v16, %v75_v17 }
 0x104   :  { %v77_v19 = vsub.f32 0.0, %v76_v18 }
 0x106   :  { %v78_v20 = vmul.f32 1.442695, %v77_v19 }
 0x108   :  { %148 = vpow2.f32 %v78_v20 }
 0x10e   :  { %v149_v21 = vpop.eup %148 }
 0x10f   :  { %v80_v22 = vsub.f32 1.0, %v149_v21 }
 0x111   :  { %v81_v23 = vmax.f32 %v80_v22, 0.0 }
 0x113   :  { %v82_v24 = vmul.f32 %v81_v23, %v81_v23 }
 0x115   :  { %v83_v25 = vmul.f32 %v82_v24, %v76_v18 }
 0x117   :  { %v86_v26 = vsel %vm85_vm2, %v83_v25, 0.0 }
 0x118   :  { %87 = vadd.xlane.f32.xlu2 %v86_v26 }
 0x18b   :  { %v88_v28 = vpop.xlane.xlu2 %87 }
 0x18c   :  { %v89_v29 = vrot.slane %v88_v28, 4 }
 0x18e   :  { %v90_v30 = vadd.f32 %v89_v29, %v88_v28 }
 0x190   :  { %v91_v31 = vrot.slane %v90_v30, 2 }
 0x192   :  { %v92_v32 = vadd.f32 %v91_v31, %v90_v30 }
 0x194   :  { %v93_v33 = vrot.slane %v92_v32, 1 }
 0x196   :  { %v94_v34 = vadd.f32 %v93_v33, %v92_v32 }
 0x198   :  { %136 = vpush %v94_v34 }
 0x1c9   :  { %s137_s0 = spop %136 }
 0x1ca   :  { %v96_v36 = vstv %s137_s0 }
 0x1cb   :  { %v97_v37 = vadd.f32 %v96_v36, %v84_v35 }
 0x1cd   :  { %99 = vst.msk [vmem:[#allocation2] sm:$0x1] %vm50_vm3, %v97_v37 }
 0x1d4   :  { %v103_v38 = vld [vmem:[#allocation2] sm:$0x1] }
 0x1d5   :  { %138 = vpush %v103_v38 }
 0x206   :  { %s139_s15 = spop %138 }
 0x207   :  { %s106_s16 = smul.f32 0.125, %s139_s15 }
 0x209   :  { %108 = sst [smem:[#allocation3]] %s106_s16 }
 0x20a   :  { %117 = dma.smem_to_hbm %s166_s17, 16, %s115_s14, [#allocation4]  }
 0x20b   :  { %162 = dma.done.wait [#allocation4], 16  }
 0x20c   :  { %163 = vsyncadd [#allocation4], 4294967280 }
 0x20d   :  { %122 = sfence }
 0x20e   :  { %123 = vsyncpa [#allocation4], 1 }

</bundles_post_ra>
